<compile_context>
chip_gen: v7x
topology: tpu7x:2x2x1
jax: 0.10.0
libtpu: 0.0.40
codegen_flags: <defaults>
</compile_context>

<pallas_src>
import jax
import jax.numpy as jnp
from jax.experimental import pallas as pl
from jax.experimental.pallas import tpu as pltpu


def _round_up(x, m):
    return (x + m - 1) // m * m


def _disc_kernel(x_ref, lab_ref, w1_ref, lp_ref, w2_ref, b2_ref, o_ref):
    # x_ref:  [TB, D]      lab_ref: [TB, 1] i32   w1_ref: [D, H]
    # lp_ref: [C_pad, H]   w2_ref:  [1, H]        b2_ref: [1] (SMEM)   o_ref: [TB, 1]
    # First layer on the MXU: x @ W1[:D].
    h = jnp.dot(x_ref[...], w1_ref[...], preferred_element_type=jnp.float32)

    # Embedding + concat folded in: one-hot(labels) @ (emb @ W1[D:] + b1).
    c_pad = lp_ref.shape[0]
    lane_ids = jax.lax.broadcasted_iota(jnp.int32, (1, c_pad), 1)
    onehot = jnp.where(lab_ref[...] == lane_ids, 1.0, 0.0)          # [TB, C_pad] f32
    h = h + jnp.dot(onehot, lp_ref[...], preferred_element_type=jnp.float32)

    h = jnp.maximum(h, 0.0)                                          # ReLU

    # Second layer (128 -> 1): VPU multiply + XLU lane reduction instead of an N=1 matmul.
    z = jnp.sum(h * w2_ref[...], axis=-1, keepdims=True) + b2_ref[0]  # [TB, 1]
    o_ref[...] = jax.nn.sigmoid(z)                                    # Sigmoid


def discriminator_forward(x, labels, params, *, block_b=1024):
    """x: [B, input_dim] f32, labels: [B] int -> [B, 1] f32 sigmoid probabilities."""
    emb, w1, b1, w2, b2 = (
        params["label_emb"], params["w1"], params["b1"], params["w2"], params["b2"]
    )
    B, D = x.shape
    H = w1.shape[1]
    C = emb.shape[0]

    # Fold the embedding path into the first layer (tiny [C, H] precompute; under jit /
    # per param update this is effectively free).  b1 is folded in as well: every row
    # selects exactly one one-hot entry, so it is added exactly once.
    w1_x = w1[:D, :]                                                  # [D, H]
    label_proj = (
        jnp.dot(emb, w1[D:, :], precision=jax.lax.Precision.HIGHEST) + b1[None, :]
    )                                                                 # [C, H]
    C_pad = _round_up(C, 8)
    if C_pad != C:
        label_proj = jnp.pad(label_proj, ((0, C_pad - C), (0, 0)))
    w2_row = w2.reshape(1, H)                                         # [1, H]
    b2_s = b2.reshape(1).astype(jnp.float32)                          # SMEM scalar

    # Batch tiling: sublane-aligned tiles, grid over batch marked "parallel".
    tb = _round_up(min(block_b, _round_up(B, 8)), 8)
    B_pad = _round_up(B, tb)
    x_pad = x.astype(jnp.float32)
    lab = labels.astype(jnp.int32)
    if B_pad != B:
        x_pad = jnp.pad(x_pad, ((0, B_pad - B), (0, 0)))
        lab = jnp.pad(lab, (0, B_pad - B))
    lab2d = lab.reshape(B_pad, 1)

    out = pl.pallas_call(
        _disc_kernel,
        out_shape=jax.ShapeDtypeStruct((B_pad, 1), jnp.float32),
        grid=(B_pad // tb,),
        in_specs=[
            pl.BlockSpec((tb, D), lambda i: (i, 0)),                  # x tile
            pl.BlockSpec((tb, 1), lambda i: (i, 0)),                  # labels tile
            pl.BlockSpec((D, H), lambda i: (0, 0)),                   # W1[:D]  (resident)
            pl.BlockSpec((C_pad, H), lambda i: (0, 0)),               # label_proj (resident)
            pl.BlockSpec((1, H), lambda i: (0, 0)),                   # w2 row  (resident)
            pl.BlockSpec(memory_space=pltpu.MemorySpace.SMEM),        # b2 scalar
        ],
        out_specs=pl.BlockSpec((tb, 1), lambda i: (i, 0)),
        compiler_params=pltpu.CompilerParams(
            dimension_semantics=("parallel",),                        # megacore split on v7x
        ),
    )(x_pad, lab2d, w1_x, label_proj, w2_row, b2_s)
    return out[:B]


def init_params(key, input_dim, num_classes, hidden=128):
    k_emb, k_w1, k_b1, k_w2, k_b2 = jax.random.split(key, 5)
    in1 = input_dim + num_classes
    # Roughly torch defaults: N(0,1) embedding, U(-1/sqrt(fan_in), 1/sqrt(fan_in)) linears.
    emb = jax.random.normal(k_emb, (num_classes, num_classes), jnp.float32)
    lim1 = 1.0 / jnp.sqrt(in1)
    lim2 = 1.0 / jnp.sqrt(hidden)
    w1 = jax.random.uniform(k_w1, (in1, hidden), jnp.float32, -lim1, lim1)
    b1 = jax.random.uniform(k_b1, (hidden,), jnp.float32, -lim1, lim1)
    w2 = jax.random.uniform(k_w2, (hidden, 1), jnp.float32, -lim2, lim2)
    b2 = jax.random.uniform(k_b2, (1,), jnp.float32, -lim2, lim2)
    return {"label_emb": emb, "w1": w1, "b1": b1, "w2": w2, "b2": b2}


if __name__ == "__main__":
    key = jax.random.PRNGKey(0)
    k_params, k_x, k_lab = jax.random.split(key, 3)

    batch = 37            # deliberately not a multiple of 8 to exercise padding
    input_dim = 41        # NSL-KDD-style feature count
    num_classes = 5       # {normal, DoS, Probe, R2L, U2R}

    params = init_params(k_params, input_dim, num_classes)
    x = jax.random.normal(k_x, (batch, input_dim), jnp.float32)
    labels = jax.random.randint(k_lab, (batch,), 0, num_classes, jnp.int32)

    out = discriminator_forward(x, labels, params)
    out = jax.block_until_ready(out)

    # Reference (un-folded math, matching the torch module exactly).
    c = jnp.take(params["label_emb"], labels, axis=0)
    xc = jnp.concatenate([x, c], axis=1)
    h = jnp.maximum(
        jnp.dot(xc, params["w1"], precision=jax.lax.Precision.HIGHEST) + params["b1"], 0.0
    )
    ref = jax.nn.sigmoid(
        jnp.dot(h, params["w2"], precision=jax.lax.Precision.HIGHEST) + params["b2"]
    )

    assert out.shape == (batch, 1)
    assert jnp.allclose(out, ref, atol=1e-4, rtol=1e-4), float(jnp.max(jnp.abs(out - ref)))

    print("KERNEL_OK")
</pallas_src>

<mosaic_0001>
module attributes {stable_mosaic.version = 11 : i64} {
  func.func @_disc_kernel(%arg0: i32, %arg1: memref<40x41xf32, #tpu.memory_space<vmem>>, %arg2: memref<40x1xi32, #tpu.memory_space<vmem>>, %arg3: memref<41x128xf32, #tpu.memory_space<vmem>>, %arg4: memref<8x128xf32, #tpu.memory_space<vmem>>, %arg5: memref<1x128xf32, #tpu.memory_space<vmem>>, %arg6: memref<1xf32, #tpu.memory_space<smem>>, %arg7: memref<40x1xf32, #tpu.memory_space<vmem>>) attributes {dimension_semantics = [#tpu.dimension_semantics<parallel>], iteration_bounds = array<i64: 1>, scalar_prefetch = 0 : i64, scratch_operands = 0 : i64, tpu.core_type = #tpu.core_type<tc>, window_params = [{transform_indices = @transform_0, window_bounds = array<i64: 40, 41>}, {transform_indices = @transform_1, window_bounds = array<i64: 40, 1>}, {pipeline_mode = #tpu.pipeline_mode<synchronous>, transform_indices = @transform_2, window_bounds = array<i64: 41, 128>}, {pipeline_mode = #tpu.pipeline_mode<synchronous>, transform_indices = @transform_3, window_bounds = array<i64: 8, 128>}, {pipeline_mode = #tpu.pipeline_mode<synchronous>, transform_indices = @transform_4, window_bounds = array<i64: 1, 128>}, {transform_indices = @transform_5, window_bounds = array<i64: 1>}, {transform_indices = @transform_6, window_bounds = array<i64: 40, 1>}]} {
    %c0 = arith.constant 0 : index
    %c0_0 = arith.constant 0 : index
    %0 = vector.load %arg1[%c0, %c0_0] : memref<40x41xf32, #tpu.memory_space<vmem>>, vector<40x41xf32>
    %c0_1 = arith.constant 0 : index
    %c0_2 = arith.constant 0 : index
    %1 = vector.load %arg3[%c0_1, %c0_2] : memref<41x128xf32, #tpu.memory_space<vmem>>, vector<41x128xf32>
    %cst = arith.constant dense<0.000000e+00> : vector<40x128xf32>
    %2 = tpu.matmul %0, %1, %cst {dimension_numbers = #tpu.dot_dimension_numbers<[1], [0], [0], [1], [0, 0, 1, 1], [], []>} : vector<40x41xf32>, vector<41x128xf32>, vector<40x128xf32> -> vector<40x128xf32>
    %3 = tpu.iota {dimensions = array<i32: 1>} : vector<1x8xi32>
    %c0_3 = arith.constant 0 : index
    %c0_4 = arith.constant 0 : index
    %4 = vector.load %arg2[%c0_3, %c0_4] : memref<40x1xi32, #tpu.memory_space<vmem>>, vector<40x1xi32>
    %5 = vector.broadcast %4 : vector<40x1xi32> to vector<40x8xi32>
    %6 = vector.broadcast %3 : vector<1x8xi32> to vector<40x8xi32>
    %7 = arith.cmpi eq, %5, %6 : vector<40x8xi32>
    %cst_5 = arith.constant 1.000000e+00 : f32
    %cst_6 = arith.constant 0.000000e+00 : f32
    %8 = vector.broadcast %cst_5 : f32 to vector<40x8xf32>
    %9 = vector.broadcast %cst_6 : f32 to vector<40x8xf32>
    %10 = arith.select %7, %8, %9 : vector<40x8xi1>, vector<40x8xf32>
    %c0_7 = arith.constant 0 : index
    %c0_8 = arith.constant 0 : index
    %11 = vector.load %arg4[%c0_7, %c0_8] : memref<8x128xf32, #tpu.memory_space<vmem>>, vector<8x128xf32>
    %cst_9 = arith.constant dense<0.000000e+00> : vector<40x128xf32>
    %12 = tpu.matmul %10, %11, %cst_9 {dimension_numbers = #tpu.dot_dimension_numbers<[1], [0], [0], [1], [0, 0, 1, 1], [], []>} : vector<40x8xf32>, vector<8x128xf32>, vector<40x128xf32> -> vector<40x128xf32>
    %13 = arith.addf %2, %12 : vector<40x128xf32>
    %cst_10 = arith.constant 0.000000e+00 : f32
    %14 = vector.broadcast %cst_10 : f32 to vector<40x128xf32>
    %15 = arith.maximumf %13, %14 : vector<40x128xf32>
    %c0_11 = arith.constant 0 : index
    %c0_12 = arith.constant 0 : index
    %16 = vector.load %arg5[%c0_11, %c0_12] : memref<1x128xf32, #tpu.memory_space<vmem>>, vector<1x128xf32>
    %17 = vector.broadcast %16 : vector<1x128xf32> to vector<40x128xf32>
    %18 = arith.mulf %15, %17 : vector<40x128xf32>
    %cst_13 = arith.constant dense<0.000000e+00> : vector<40xf32>
    %19 = vector.multi_reduction <add>, %18, %cst_13 [1] : vector<40x128xf32> to vector<40xf32>
    %20 = vector.shape_cast %19 : vector<40xf32> to vector<40x1xf32>
    %c0_14 = arith.constant 0 : index
    %21 = memref.load %arg6[%c0_14] : memref<1xf32, #tpu.memory_space<smem>>
    %22 = vector.broadcast %21 : f32 to vector<40x1xf32>
    %23 = arith.addf %20, %22 : vector<40x1xf32>
    %24 = arith.negf %23 : vector<40x1xf32>
    %25 = math.exp %24 : vector<40x1xf32>
    %cst_15 = arith.constant 1.000000e+00 : f32
    %26 = vector.broadcast %cst_15 : f32 to vector<40x1xf32>
    %27 = arith.addf %26, %25 : vector<40x1xf32>
    %28 = arith.divf %26, %27 : vector<40x1xf32>
    %c0_16 = arith.constant 0 : index
    %c0_17 = arith.constant 0 : index
    %29 = vector.load %arg7[%c0_16, %c0_17] : memref<40x1xf32, #tpu.memory_space<vmem>>, vector<40x1xf32>
    tpu.vector_store %arg7[%c0_16, %c0_17], %28 {strides = array<i32>} : memref<40x1xf32, #tpu.memory_space<vmem>>, vector<40x1xf32>,
    return
  }
  func.func @transform_0(%arg0: i32) -> (i32, i32) {
    %c0_i32 = arith.constant 0 : i32
    %c0_i32_0 = arith.constant 0 : i32
    return %arg0, %c0_i32 : i32, i32
  }
  func.func @transform_1(%arg0: i32) -> (i32, i32) {
    %c0_i32 = arith.constant 0 : i32
    %c0_i32_0 = arith.constant 0 : i32
    return %arg0, %c0_i32 : i32, i32
  }
  func.func @transform_2(%arg0: i32) -> (i32, i32) {
    %c0_i32 = arith.constant 0 : i32
    %c0_i32_0 = arith.constant 0 : i32
    %c0_i32_1 = arith.constant 0 : i32
    return %c0_i32, %c0_i32_0 : i32, i32
  }
  func.func @transform_3(%arg0: i32) -> (i32, i32) {
    %c0_i32 = arith.constant 0 : i32
    %c0_i32_0 = arith.constant 0 : i32
    %c0_i32_1 = arith.constant 0 : i32
    return %c0_i32, %c0_i32_0 : i32, i32
  }
  func.func @transform_4(%arg0: i32) -> (i32, i32) {
    %c0_i32 = arith.constant 0 : i32
    %c0_i32_0 = arith.constant 0 : i32
    %c0_i32_1 = arith.constant 0 : i32
    return %c0_i32, %c0_i32_0 : i32, i32
  }
  func.func @transform_5(%arg0: i32) -> i32 {
    %c0_i32 = arith.constant 0 : i32
    %c0_i32_0 = arith.constant 0 : i32
    return %c0_i32 : i32
  }
  func.func @transform_6(%arg0: i32) -> (i32, i32) {
    %c0_i32 = arith.constant 0 : i32
    %c0_i32_0 = arith.constant 0 : i32
    return %arg0, %c0_i32 : i32, i32
  }
}

</mosaic_0001>

<bundles_post_ra>
// kernel: tpu_custom_call.1
= control target key start
LH: loop header
LB: loop body
LE: loop exit
PB: predicated region body
PF: predicated region fallthrough
CT: control target
= control target key end

     0   :  { %12 = vsyncpa [#allocation4], 0  ;;  %s527_s21 = smov [#allocation3]   ;;  %s694_s0 = inlined_call_operand.hbm [shape: f32[40,41], index: 0, kind: input, shape index: {}]   ;;  %s695_s1 = inlined_call_operand.vmem [shape: s32[40,1], index: 1, kind: input, shape index: {}]   ;;  %s696_s2 = inlined_call_operand.vmem [shape: f32[41,128], index: 2, kind: input, shape index: {}]   ;;  %s697_s3 = inlined_call_operand.vmem [shape: f32[8,128], index: 3, kind: input, shape index: {}]   ;;  %s698_s4 = inlined_call_operand.vmem [shape: f32[1,128], index: 4, kind: input, shape index: {}]   ;;  %s699_s5 = inlined_call_operand.<no memory space> [shape: f32[1], index: 5, kind: input, shape index: {}]   ;;  %s700_s6 = inlined_call_operand.vmem [shape: f32[40,1], index: 6, kind: output, shape index: {}]  }
   0x1   :  { %s18_s22 = sshll.u32 %s527_s21, 4  ;;  %s503_s25 = scalar_lea.hbm %s694_s0, 640  ;;  %s19_s22 = int_to_ptr.vmem [resolvable:$true] %s18_s22 }
   0x2   :  { %p504_p0 = scmp.ne.s32.totalorder %s694_s0, %s503_s25  ;;  %p507_p1 = scmp.lt.u32.totalorder %s503_s25, %s694_s0 }
   0x4   :  { %p509_p2 = pnand %p507_p1, %p504_p0 }
   0x6   :  { %512 = shalt.err (!%p509_p2)
}
   0x7   :  { %s513_s30 = scalar_lea.vmem %s19_s22, 640  ;;  %p518_p4 = scmp.lt.s32.totalorder %s19_s22, %s19_s22 }
   0x8   :  { %p514_p3 = scmp.ne.s32.totalorder %s19_s22, %s513_s30  ;;  %p519_p5 = scmp.lt.s32.totalorder %s513_s30, %s513_s30 }
   0xa   :  { %p520_p6 = por %p519_p5, %p518_p4 }
   0xc   :  { %p521_p7 = pnand %p520_p6, %p514_p3 }
   0xe   :  { %524 = shalt.err (!%p521_p7)
}
   0xf   :  { %s528_s7 = smov 128   ;;  %s529_s8 = smov 8  }
  0x10   :  { %24 = dma.hbm_to_vmem [thread:$0]  %s694_s0, 640, %s19_s22, [#allocation4], %s528_s7, %s528_s7, %s529_s8  }
  0x11   :  { %525 = dma.done.wait [#allocation4], 640  }
  0x12   :  { %526 = vsyncadd [#allocation4], 4294966656  ;;  %v530_v0 = vmov 0   ;;  %v531_v1 = vmov 0.0|0.0   ;;  %v532_v2 = vmov 0.0   ;;  %v51_v3 = vld [vmem:[%s695_s1] sm:$0xff]  ;;  %v49_v23 = vlaneseq }
  0x13   :  { %481 = vset.pattern.permute.xlu0 %v530_v0  ;;  %482 = vset.pattern.permute.xlu1 %v530_v0  ;;  %v53_v4 = vld [vmem:[%s695_s1 + $0x10] sm:$0xff]  ;;  %v43_v5 = vld [vmem:[%s696_s2] sm:$0xff]  ;;  %v52_v6 = vld [vmem:[%s695_s1 + $0x8] sm:$0xff]  ;;  %vm533_vm0 = vmmov 0   ;;  %vm204_vm1 = vcmask 1040384   ;;  %vm534_vm2 = vmmov 1  }
  0x14   :  { %461 = vmatprep.subr.bf16.mxu1 %v531_v1  ;;  %407 = vmatprep.subr.mxu0 %v532_v2  ;;  %v54_v7 = vld [vmem:[%s695_s1 + $0x18] sm:$0xff]  ;;  %v44_v8 = vld [vmem:[%s696_s2 + $0x8] sm:$0xff]  ;;  %v45_v10 = vld [vmem:[%s696_s2 + $0x10] sm:$0xff]  ;;  %vm188_vm4 = vcmask 334848   ;;  %v50_v24 = vand.u32 127, %v49_v23  ;;  %vm82_vm5 = vcmask 64512  }
  0x15   :  { %57 = vperm.xlu0 %481, %v51_v3   ;;  %63 = vperm.xlu1 %482, %v53_v4   ;;  %v452_v9 = vpack.c.bf16 %v44_v8, %v43_v5  ;;  %v46_v11 = vld [vmem:[%s696_s2 + $0x18] sm:$0xff]  ;;  %v81_v12 = vld [vmem:[%s697_s3] sm:$0xff]  ;;  %v48_v16 = vld [vmem:[%s696_s2 + $0x28] sm:$0x1]  ;;  %v326_v5 = vstv %s699_s5  ;;  %vm362_vm11 = vcmask 7168  }
  0x16   :  { %409 = vmatprep.mubr.msk.f32.mxu0 %vm533_vm0, %v532_v2  ;;  %439 = vmatprep.mubr.msk.f32.mxu1 %vm533_vm0, %v532_v2  ;;  %v55_v13 = vld [vmem:[%s695_s1 + $0x20] sm:$0xff]  ;;  %v455_v14 = vpack.c.bf16 %v46_v11, %v45_v10  ;;  %vm627_vm3 = vmpackc.low %vm204_vm1, %vm534_vm2  ;;  %v39_v19 = vld [vmem:[#allocation3 + $0x8] sm:$0xff] }
  0x17   :  { %408 = vmatpush3.msra.mxu0 %v81_v12  ;;  %464 = vmatpush3.bf16.msra.mxu1 %v452_v9  ;;  %v47_v15 = vld [vmem:[%s696_s2 + $0x20] sm:$0xff]  ;;  %v40_v20 = vld [vmem:[#allocation3 + $0x10] sm:$0xff]  ;;  %v41_v21 = vld [vmem:[#allocation3 + $0x18] sm:$0xff] }
  0x18   :  { %451 = vmatprep.subr.bf16.mxu0 %v531_v1  ;;  %462 = vmatprep.subr.bf16.mxu1 %v531_v1  ;;  %v458_v17 = vpack.c.bf16 %v48_v16, %v47_v15  ;;  %v42_v22 = vld [vmem:[#allocation3 + $0x20] sm:$0xff] }
  0x19   :  { %60 = vperm.xlu0 %481, %v52_v6   ;;  %66 = vperm.xlu1 %482, %v54_v7   ;;  %v38_v35 = vld [vmem:[#allocation3] sm:$0xff] }
  0x1a   :  { %v384_v47 = vld [vmem:[%s698_s4] ss:$0 sm:$0xff] }
  0x1b   :  { %465 = vmatpush3.bf16.msra.mxu1 %v455_v14 }
  0x1c   :  { %463 = vmatprep.subr.bf16.mxu1 %v531_v1 }
  0x1d   :  { %69 = vperm.xlu0 %481, %v55_v13  }
  0x1f   :  { %466 = vmatpush3.bf16.msk.msra.mxu1 %vm627_vm3, %v458_v17 }
  0x22   :  { %440 = vmatmul.mubr.msk.f32.vlgmr.msra.gmra.mrb[0].mxu1 %vm188_vm4, %v39_v19 }
  0x23   :  { %442 = vmatprep.mubr.msk.f32.mxu1 %vm533_vm0, %v532_v2 }
  0x26   :  { %443 = vmatmul.mubr.msk.f32.gmra.mrb[2].mxu1 %vm188_vm4, %v40_v20 }
  0x27   :  { %445 = vmatprep.mubr.msk.f32.mxu1 %vm533_vm0, %v532_v2 }
  0x2a   :  { %446 = vmatmul.mubr.msk.f32.gmra.mrb[4].mxu1 %vm188_vm4, %v41_v21 }
  0x2b   :  { %448 = vmatprep.mubr.msk.f32.mxu1 %vm533_vm0, %v532_v2 }
  0x2e   :  { %449 = vmatmul.mubr.msk.f32.gmra.mrb[6].mxu1 %vm188_vm4, %v42_v22 }
  0x94   :  { %v58_v25 = vpop.permute.xlu0 %57  ;;  %v64_v27 = vpop.permute.xlu1 %63 }
  0x95   :  { %vm71_vm6 = vcmp.eq.s32.totalorder %v58_v25, %v50_v24  ;;  %vm73_vm7 = vcmp.eq.s32.totalorder %v64_v27, %v50_v24 }
  0x96   :  { %v76_v26 = vsel %vm71_vm6, 1.0, %v532_v2  ;;  %v78_v30 = vsel %vm73_vm7, 1.0, %v532_v2 }
  0x97   :  { %410 = vmatmul.mubr.msk.f32.vlgmr.msra.gmra.mrb[0].mxu0 %vm82_vm5, %v76_v26 }
  0x98   :  { %453 = vmatpush3.bf16.msra.mxu0 %v452_v9  ;;  %v61_v28 = vpop.permute.xlu0 %60  ;;  %412 = vmatprep.mubr.msk.f32.mxu0 %vm533_vm0, %v532_v2  ;;  %v67_v31 = vpop.permute.xlu1 %66 }
  0x99   :  { %vm72_vm8 = vcmp.eq.s32.totalorder %v61_v28, %v50_v24  ;;  %454 = vmatprep.subr.bf16.mxu0 %v531_v1  ;;  %vm74_vm9 = vcmp.eq.s32.totalorder %v67_v31, %v50_v24 }
  0x9a   :  { %v77_v29 = vsel %vm72_vm8, 1.0, %v532_v2  ;;  %v79_v33 = vsel %vm74_vm9, 1.0, %v532_v2 }
  0x9b   :  { %413 = vmatmul.mubr.msk.f32.gmra.mrb[2].mxu0 %vm82_vm5, %v77_v29 }
  0x9c   :  { %415 = vmatprep.mubr.msk.f32.mxu0 %vm533_vm0, %v532_v2  ;;  %456 = vmatpush3.bf16.msra.mxu0 %v455_v14  ;;  %v70_v32 = vpop.permute.xlu0 %69 }
  0x9d   :  { %457 = vmatprep.subr.bf16.mxu0 %v531_v1  ;;  %vm75_vm10 = vcmp.eq.s32.totalorder %v70_v32, %v50_v24 }
  0x9e   :  { %v80_v34 = vsel %vm75_vm10, 1.0, %v532_v2 }
  0x9f   :  { %416 = vmatmul.mubr.msk.f32.gmra.mrb[4].mxu0 %vm82_vm5, %v78_v30 }
  0xa0   :  { %418 = vmatprep.mubr.msk.f32.mxu0 %vm533_vm0, %v532_v2  ;;  %460 = vmatpush3.bf16.msk.msra.mxu0 %vm627_vm3, %v458_v17 }
  0xa3   :  { %419 = vmatmul.mubr.msk.f32.gmra.mrb[6].mxu0 %vm82_vm5, %v79_v33 }
  0xa4   :  { %421 = vmatprep.mubr.msk.f32.mxu0 %vm533_vm0, %v532_v2 }
  0xa7   :  { %422 = vmatmul.mubr.msk.f32.gmra.mrb[8].mxu0 %vm82_vm5, %v80_v34 }
  0xa8   :  { %436 = vmatprep.mubr.msk.f32.mxu0 %vm533_vm0, %v532_v2 }
  0xab   :  { %437 = vmatmul.mubr.msk.f32.vlgmr.msra.gmra.mrb[0].mxu0 %vm188_vm4, %v38_v35 }
  0xf5   :  { %v279_v36 = vpop.f32.mrb[0].mxu1 }
  0xf6   :  { %v441_v37 = vpop.f32.mrb[1].mxu1 }
  0xf9   :  { %v284_v38 = vpop.f32.mrb[2].mxu1 }
  0xfa   :  { %v444_v39 = vpop.f32.mrb[3].mxu1 }
  0xfd   :  { %v289_v40 = vpop.f32.mrb[4].mxu1 }
  0xfe   :  { %v447_v41 = vpop.f32.mrb[5].mxu1 }
 0x101   :  { %v294_v42 = vpop.f32.mrb[6].mxu1 }
 0x102   :  { %v450_v43 = vpop.f32.mrb[7].mxu1 }
 0x16e   :  { %v169_v44 = vpop.f32.mrb[2].mxu0 }
 0x16f   :  { %v280_v45 = vadd.f32 %v279_v36, %v169_v44  ;;  %v414_v46 = vpop.f32.mrb[3].mxu0 }
 0x171   :  { %v299_v48 = vmax.f32 %v280_v45, 0.0 }
 0x172   :  { %v174_v49 = vpop.f32.mrb[4].mxu0 }
 0x173   :  { %v285_v50 = vadd.f32 %v284_v38, %v174_v49  ;;  %v417_v51 = vpop.f32.mrb[5].mxu0  ;;  %v311_v52 = vmul.f32 %v384_v47, %v299_v48 }
 0x175   :  { %v300_v53 = vmax.f32 %v285_v50, 0.0  ;;  %317 = vadd.xlane.f32.xlu0 %v311_v52 }
 0x176   :  { %v179_v54 = vpop.f32.mrb[6].mxu0 }
 0x177   :  { %v290_v55 = vadd.f32 %v289_v40, %v179_v54  ;;  %v420_v56 = vpop.f32.mrb[7].mxu0  ;;  %v312_v57 = vmul.f32 %v384_v47, %v300_v53 }
 0x179   :  { %319 = vadd.xlane.f32.xlu0 %v312_v57  ;;  %v301_v2 = vmax.f32 %v290_v55, 0.0 }
 0x17a   :  { %v184_v58 = vpop.f32.mrb[8].mxu0 }
 0x17b   :  { %v295_v59 = vadd.f32 %v294_v42, %v184_v58  ;;  %v423_v60 = vpop.f32.mrb[9].mxu0  ;;  %v313_v4 = vmul.f32 %v384_v47, %v301_v2 }
 0x17d   :  { %v302_v61 = vmax.f32 %v295_v59, 0.0 }
 0x17e   :  { %v274_v62 = vpop.f32.mrb[0].mxu0 }
 0x17f   :  { %v298_v63 = vmax.f32 %v274_v62, 0.0  ;;  %v438_v0 = vpop.f32.mrb[1].mxu0  ;;  %v314_v1 = vmul.f32 %v384_v47, %v302_v61 }
 0x181   :  { %323 = vadd.xlane.f32.xlu0 %v314_v1  ;;  %v310_v3 = vmul.f32 %v384_v47, %v298_v63 }
 0x183   :  { %315 = vadd.xlane.f32.xlu1 %v310_v3 }
 0x187   :  { %321 = vadd.xlane.f32.xlu1 %v313_v4 }
 0x202   :  { %v318_v6 = vpop.xlane.xlu0 %317 }
 0x203   :  { %v328_v7 = vadd.f32 %v326_v5, %v318_v6 }
 0x205   :  { %v386_v8 = vmul.f32 -1.442695, %v328_v7 }
 0x206   :  { %v320_v9 = vpop.xlane.xlu0 %319 }
 0x207   :  { %483 = vpow2.f32 %v386_v8  ;;  %v329_v10 = vadd.f32 %v326_v5, %v320_v9 }
 0x209   :  { %v387_v11 = vmul.f32 -1.442695, %v329_v10 }
 0x20b   :  { %485 = vpow2.f32 %v387_v11 }
 0x20e   :  { %v324_v12 = vpop.xlane.xlu0 %323 }
 0x20f   :  { %v331_v13 = vadd.f32 %v326_v5, %v324_v12 }
 0x210   :  { %v316_v14 = vpop.xlane.xlu1 %315 }
 0x211   :  { %v484_v15 = vpop.eup %483  ;;  %v389_v16 = vmul.f32 -1.442695, %v331_v13  ;;  %v327_v17 = vadd.f32 %v326_v5, %v316_v14 }
 0x212   :  { %v348_v18 = vadd.f32 1.0, %v484_v15 }
 0x213   :  { %487 = vpow2.f32 %v389_v16  ;;  %v385_v19 = vmul.f32 -1.442695, %v327_v17 }
 0x214   :  { %489 = vrcp.f32 %v348_v18  ;;  %v322_v20 = vpop.xlane.xlu1 %321 }
 0x215   :  { %v486_v21 = vpop.eup %485  ;;  %491 = vpow2.f32 %v385_v19  ;;  %v330_v22 = vadd.f32 %v326_v5, %v322_v20 }
 0x216   :  { %v349_v23 = vadd.f32 1.0, %v486_v21 }
 0x217   :  { %v388_v24 = vmul.f32 -1.442695, %v330_v22 }
 0x218   :  { %493 = vrcp.f32 %v349_v23 }
 0x219   :  { %495 = vpow2.f32 %v388_v24 }
 0x21d   :  { %v488_v25 = vpop.eup %487 }
 0x21e   :  { %v490_v26 = vpop.eup %489  ;;  %v351_v27 = vadd.f32 1.0, %v488_v25 }
 0x21f   :  { %v492_v28 = vpop.eup %491  ;;  %364 = vst.msk [vmem:[%s700_s6 + $0x8] sm:$0xff] %vm362_vm11, %v490_v26 }
 0x220   :  { %497 = vrcp.f32 %v351_v27  ;;  %v347_v29 = vadd.f32 1.0, %v492_v28 }
 0x222   :  { %v494_v30 = vpop.eup %493  ;;  %499 = vrcp.f32 %v347_v29 }
 0x223   :  { %v496_v31 = vpop.eup %495  ;;  %365 = vst.msk [vmem:[%s700_s6 + $0x10] sm:$0xff] %vm362_vm11, %v494_v30 }
 0x224   :  { %v350_v32 = vadd.f32 1.0, %v496_v31 }
 0x226   :  { %501 = vrcp.f32 %v350_v32 }
 0x22a   :  { %v498_v33 = vpop.eup %497 }
 0x22b   :  { %367 = vst.msk [vmem:[%s700_s6 + $0x20] sm:$0xff] %vm362_vm11, %v498_v33 }
 0x22c   :  { %v500_v34 = vpop.eup %499 }
 0x22d   :  { %363 = vst.msk [vmem:[%s700_s6] sm:$0xff] %vm362_vm11, %v500_v34 }
 0x230   :  { %v502_v35 = vpop.eup %501 }
 0x231   :  { %366 = vst.msk [vmem:[%s700_s6 + $0x18] sm:$0xff] %vm362_vm11, %v502_v35 }
 0x232   :  { %372 = vsyncpa [#allocation4], 1 }

</bundles_post_ra>
